<compile_context>
chip_gen: v6e
topology: v6e:2x2x1
jax: 0.10.0
libtpu: 0.0.40
codegen_flags: <defaults>
</compile_context>

<pallas_src>
import jax
import jax.numpy as jnp
import numpy as np
from jax.experimental import pallas as pl
from jax.experimental.pallas import tpu as pltpu

KCONV = 5  # char-CNN kernel width, Conv2d kernel_size=(1, 5)


def _round_up(x, m):
    return ((x + m - 1) // m) * m


def embedding_kernel(char_ref, word_ref, band_ref, bc_ref, wp_ref,
                     wgt0_ref, bgt0_ref, wgt1_ref, bgt1_ref, out_ref):
    H = out_ref.shape[-1]

    # --- char CNN: Conv2d(Dc, H, (1,5)) as a single banded matmul ----------
    # char_ref : (tm, W*Dc) lane-dense;   band_ref : (W*Dc, P*H)
    ce = char_ref[...].astype(jnp.float32)
    acc = jnp.dot(ce, band_ref[...], preferred_element_type=jnp.float32)  # (tm, P*H)
    P = acc.shape[-1] // H

    # max over the P conv positions (H-lane groups), then bias + relu.
    # relu(max_p(a_p) + b) == max_p(relu(a_p + b))  (both maps are monotone).
    feat = acc[:, 0:H]
    for p_ in range(1, P):
        feat = jnp.maximum(feat, acc[:, p_ * H:(p_ + 1) * H])
    char_feat = jnp.maximum(feat + bc_ref[...], 0.0)                      # (tm, H)

    # --- word embedding (dropout in inference mode -> identity) -----------
    we = word_ref[...].astype(jnp.float32)                                # (tm, Dw)

    # --- 1x1 conv projection (no bias), fused over [word | char] ----------
    xw = jnp.concatenate([we, char_feat], axis=-1)                        # (tm, Dw+H)
    emb = jnp.dot(xw, wp_ref[...], preferred_element_type=jnp.float32)    # (tm, H)

    # --- 2-layer highway, gate & transform fused into one (H, 2H) matmul --
    def hwy(x, wgt_ref, bgt_ref):
        y = jnp.dot(x, wgt_ref[...], preferred_element_type=jnp.float32) + bgt_ref[...]
        g = jax.nn.sigmoid(y[:, 0:H])           # gate      (EUP)
        t = jnp.maximum(y[:, H:], 0.0)          # transform (VPU relu)
        return g * t + (1.0 - g) * x

    x = hwy(emb, wgt0_ref, bgt0_ref)
    x = hwy(x, wgt1_ref, bgt1_ref)
    out_ref[...] = x.astype(out_ref.dtype)


def _build_band(wc, W):
    """Banded conv weight: band[w*Dc+d, p*H+h] = wc[w-p, d, h] (0 elsewhere)."""
    K, Dc, H = wc.shape
    P = W - (K - 1)
    band = jnp.zeros((W, Dc, P, H), wc.dtype)
    for p_ in range(P):
        band = band.at[p_:p_ + K, :, p_, :].set(wc)
    return band.reshape(W * Dc, P * H)


def qanet_embedding(word_idxs, char_idxs, p, *, tm=1024):
    B, S = word_idxs.shape
    W = char_idxs.shape[-1]

    # Embedding lookups (gathers) are glue; done in plain JAX from bf16 tables.
    word_emb = p["word_vectors"][word_idxs]            # (B, S, Dw)    bf16
    char_emb = p["char_vectors"][char_idxs]            # (B, S, W, Dc) bf16
    Dw = word_emb.shape[-1]
    Dc = char_emb.shape[-1]
    H = p["wc"].shape[-1]
    P = W - (KCONV - 1)
    M = B * S

    # Row tile: multiple of 8 sublanes, no larger than the (padded) row count.
    tm = _round_up(max(8, min(tm, _round_up(M, 8))), 8)
    M_pad = _round_up(M, tm)

    word_flat = word_emb.reshape(M, Dw)
    char_flat = char_emb.reshape(M, W * Dc)            # lane-dense char rows
    if M_pad != M:                                     # pad the tail tile
        word_flat = jnp.pad(word_flat, ((0, M_pad - M), (0, 0)))
        char_flat = jnp.pad(char_flat, ((0, M_pad - M), (0, 0)))

    band = _build_band(p["wc"], W)                             # (W*Dc, P*H) f32
    wgt0 = jnp.concatenate([p["wg0"], p["wt0"]], axis=1)       # (H, 2H)
    bgt0 = jnp.concatenate([p["bg0"], p["bt0"]], axis=1)       # (1, 2H)
    wgt1 = jnp.concatenate([p["wg1"], p["wt1"]], axis=1)
    bgt1 = jnp.concatenate([p["bg1"], p["bt1"]], axis=1)

    def full(shape):
        n = len(shape)
        return pl.BlockSpec(shape, lambda i, n=n: (0,) * n)

    out = pl.pallas_call(
        embedding_kernel,
        out_shape=jax.ShapeDtypeStruct((M_pad, H), jnp.float32),
        grid_spec=pltpu.PrefetchScalarGridSpec(
            num_scalar_prefetch=0,
            grid=(M_pad // tm,),
            in_specs=[
                pl.BlockSpec((tm, W * Dc), lambda i: (i, 0)),  # char rows (lane-dense)
                pl.BlockSpec((tm, Dw), lambda i: (i, 0)),      # word rows
                full((W * Dc, P * H)),                         # banded conv weight
                full((1, H)),                                  # conv bias
                full((Dw + H, H)),                             # 1x1 projection
                full((H, 2 * H)), full((1, 2 * H)),            # highway 0 (gate|transform)
                full((H, 2 * H)), full((1, 2 * H)),            # highway 1 (gate|transform)
            ],
            out_specs=pl.BlockSpec((tm, H), lambda i: (i, 0)),
        ),
        compiler_params=pltpu.CompilerParams(
            dimension_semantics=("parallel",)),
    )(char_flat, word_flat, band, p["bc"], p["wp"], wgt0, bgt0, wgt1, bgt1)
    return out[:M].reshape(B, S, H)


def reference(word_idxs, char_idxs, p):
    """Pure-JAX reference mirroring the PyTorch forward (inference mode)."""
    we = p["word_vectors"][word_idxs].astype(jnp.float32)   # (B, S, Dw)
    ce = p["char_vectors"][char_idxs].astype(jnp.float32)   # (B, S, W, Dc)
    B, S, W, Dc = ce.shape
    H = p["wc"].shape[-1]
    P = W - (KCONV - 1)
    conv = jnp.zeros((B, S, P, H), jnp.float32)
    for k in range(KCONV):
        conv = conv + jnp.einsum("bswd,dh->bswh", ce[:, :, k:k + P, :], p["wc"][k])
    conv = conv + p["bc"][0]
    char_feat = jnp.max(jax.nn.relu(conv), axis=2)          # (B, S, H)
    Dw = we.shape[-1]
    emb = we @ p["wp"][:Dw] + char_feat @ p["wp"][Dw:]

    def hwy(x, wg, bg, wt, bt):
        g = jax.nn.sigmoid(x @ wg + bg)
        t = jax.nn.relu(x @ wt + bt)
        return g * t + (1.0 - g) * x

    x = hwy(emb, p["wg0"], p["bg0"][0], p["wt0"], p["bt0"][0])
    x = hwy(x, p["wg1"], p["bg1"][0], p["wt1"], p["bt1"][0])
    return x


if __name__ == "__main__":
    # Small shapes consistent with the forward pass (W >= 5).
    B, S, W = 2, 8, 8          # batch, seq_len, word_len
    Dw, Dc, H = 32, 16, 32     # word dim, char dim, hidden_size
    Vw, Vc = 50, 30            # vocab sizes

    key = jax.random.PRNGKey(0)
    ks = jax.random.split(key, 16)
    scale = 0.1
    params = {
        # embedding tables stored bf16 (kernel casts to f32 after load)
        "word_vectors": (scale * jax.random.normal(ks[0], (Vw, Dw), jnp.float32)
                         ).astype(jnp.bfloat16),
        "char_vectors": (scale * jax.random.normal(ks[1], (Vc, Dc), jnp.float32)
                         ).astype(jnp.bfloat16),
        "wc": scale * jax.random.normal(ks[2], (KCONV, Dc, H), jnp.float32),
        "bc": scale * jax.random.normal(ks[3], (1, H), jnp.float32),
        "wp": scale * jax.random.normal(ks[4], (Dw + H, H), jnp.float32),
        "wt0": scale * jax.random.normal(ks[5], (H, H), jnp.float32),
        "bt0": scale * jax.random.normal(ks[6], (1, H), jnp.float32),
        "wg0": scale * jax.random.normal(ks[7], (H, H), jnp.float32),
        "bg0": scale * jax.random.normal(ks[8], (1, H), jnp.float32),
        "wt1": scale * jax.random.normal(ks[9], (H, H), jnp.float32),
        "bt1": scale * jax.random.normal(ks[10], (1, H), jnp.float32),
        "wg1": scale * jax.random.normal(ks[11], (H, H), jnp.float32),
        "bg1": scale * jax.random.normal(ks[12], (1, H), jnp.float32),
    }
    word_idxs = jax.random.randint(ks[13], (B, S), 0, Vw, jnp.int32)
    char_idxs = jax.random.randint(ks[14], (B, S, W), 0, Vc, jnp.int32)

    out = qanet_embedding(word_idxs, char_idxs, params, tm=1024)
    out = jax.block_until_ready(out)

    with jax.default_matmul_precision("float32"):
        ref = reference(word_idxs, char_idxs, params)
    ref = jax.block_until_ready(ref)

    np.testing.assert_allclose(np.asarray(out), np.asarray(ref),
                               atol=1e-4, rtol=1e-4)
    assert out.shape == (B, S, H)
    print("KERNEL_OK")
</pallas_src>

<mosaic_0001>
module attributes {stable_mosaic.version = 11 : i64} {
  func.func @embedding_kernel(%arg0: i32, %arg1: memref<16x128xbf16, #tpu.memory_space<vmem>>, %arg2: memref<16x32xbf16, #tpu.memory_space<vmem>>, %arg3: memref<128x128xf32, #tpu.memory_space<vmem>>, %arg4: memref<1x32xf32, #tpu.memory_space<vmem>>, %arg5: memref<64x32xf32, #tpu.memory_space<vmem>>, %arg6: memref<32x64xf32, #tpu.memory_space<vmem>>, %arg7: memref<1x64xf32, #tpu.memory_space<vmem>>, %arg8: memref<32x64xf32, #tpu.memory_space<vmem>>, %arg9: memref<1x64xf32, #tpu.memory_space<vmem>>, %arg10: memref<16x32xf32, #tpu.memory_space<vmem>>) attributes {dimension_semantics = [#tpu.dimension_semantics<parallel>], iteration_bounds = array<i64: 1>, scalar_prefetch = 0 : i64, scratch_operands = 0 : i64, tpu.core_type = #tpu.core_type<tc>, window_params = [{transform_indices = @transform_0, window_bounds = array<i64: 16, 128>}, {transform_indices = @transform_1, window_bounds = array<i64: 16, 32>}, {pipeline_mode = #tpu.pipeline_mode<synchronous>, transform_indices = @transform_2, window_bounds = array<i64: 128, 128>}, {pipeline_mode = #tpu.pipeline_mode<synchronous>, transform_indices = @transform_3, window_bounds = array<i64: 1, 32>}, {pipeline_mode = #tpu.pipeline_mode<synchronous>, transform_indices = @transform_4, window_bounds = array<i64: 64, 32>}, {pipeline_mode = #tpu.pipeline_mode<synchronous>, transform_indices = @transform_5, window_bounds = array<i64: 32, 64>}, {pipeline_mode = #tpu.pipeline_mode<synchronous>, transform_indices = @transform_6, window_bounds = array<i64: 1, 64>}, {pipeline_mode = #tpu.pipeline_mode<synchronous>, transform_indices = @transform_7, window_bounds = array<i64: 32, 64>}, {pipeline_mode = #tpu.pipeline_mode<synchronous>, transform_indices = @transform_8, window_bounds = array<i64: 1, 64>}, {transform_indices = @transform_9, window_bounds = array<i64: 16, 32>}]} {
    %c0 = arith.constant 0 : index
    %c0_0 = arith.constant 0 : index
    %0 = vector.load %arg1[%c0, %c0_0] : memref<16x128xbf16, #tpu.memory_space<vmem>>, vector<16x128xbf16>
    %1 = arith.extf %0 : vector<16x128xbf16> to vector<16x128xf32>
    %c0_1 = arith.constant 0 : index
    %c0_2 = arith.constant 0 : index
    %2 = vector.load %arg3[%c0_1, %c0_2] : memref<128x128xf32, #tpu.memory_space<vmem>>, vector<128x128xf32>
    %cst = arith.constant dense<0.000000e+00> : vector<16x128xf32>
    %3 = tpu.matmul %1, %2, %cst {dimension_numbers = #tpu.dot_dimension_numbers<[1], [0], [0], [1], [0, 0, 1, 1], [], []>} : vector<16x128xf32>, vector<128x128xf32>, vector<16x128xf32> -> vector<16x128xf32>
    %4 = vector.extract_strided_slice %3 {offsets = [0, 0], sizes = [16, 32], strides = [1, 1]} : vector<16x128xf32> to vector<16x32xf32>
    %5 = vector.extract_strided_slice %3 {offsets = [0, 32], sizes = [16, 32], strides = [1, 1]} : vector<16x128xf32> to vector<16x32xf32>
    %6 = arith.maximumf %4, %5 : vector<16x32xf32>
    %7 = vector.extract_strided_slice %3 {offsets = [0, 64], sizes = [16, 32], strides = [1, 1]} : vector<16x128xf32> to vector<16x32xf32>
    %8 = arith.maximumf %6, %7 : vector<16x32xf32>
    %9 = vector.extract_strided_slice %3 {offsets = [0, 96], sizes = [16, 32], strides = [1, 1]} : vector<16x128xf32> to vector<16x32xf32>
    %10 = arith.maximumf %8, %9 : vector<16x32xf32>
    %c0_3 = arith.constant 0 : index
    %c0_4 = arith.constant 0 : index
    %11 = vector.load %arg4[%c0_3, %c0_4] : memref<1x32xf32, #tpu.memory_space<vmem>>, vector<1x32xf32>
    %12 = vector.broadcast %11 : vector<1x32xf32> to vector<16x32xf32>
    %13 = arith.addf %10, %12 : vector<16x32xf32>
    %cst_5 = arith.constant 0.000000e+00 : f32
    %14 = vector.broadcast %cst_5 : f32 to vector<16x32xf32>
    %15 = arith.maximumf %13, %14 : vector<16x32xf32>
    %c0_6 = arith.constant 0 : index
    %c0_7 = arith.constant 0 : index
    %16 = vector.load %arg2[%c0_6, %c0_7] : memref<16x32xbf16, #tpu.memory_space<vmem>>, vector<16x32xbf16>
    %17 = arith.extf %16 : vector<16x32xbf16> to vector<16x32xf32>
    %18 = tpu.concatenate %17, %15 in 1 : vector<16x32xf32>, vector<16x32xf32> -> vector<16x64xf32>
    %c0_8 = arith.constant 0 : index
    %c0_9 = arith.constant 0 : index
    %19 = vector.load %arg5[%c0_8, %c0_9] : memref<64x32xf32, #tpu.memory_space<vmem>>, vector<64x32xf32>
    %cst_10 = arith.constant dense<0.000000e+00> : vector<16x32xf32>
    %20 = tpu.matmul %18, %19, %cst_10 {dimension_numbers = #tpu.dot_dimension_numbers<[1], [0], [0], [1], [0, 0, 1, 1], [], []>} : vector<16x64xf32>, vector<64x32xf32>, vector<16x32xf32> -> vector<16x32xf32>
    %c0_11 = arith.constant 0 : index
    %c0_12 = arith.constant 0 : index
    %21 = vector.load %arg6[%c0_11, %c0_12] : memref<32x64xf32, #tpu.memory_space<vmem>>, vector<32x64xf32>
    %cst_13 = arith.constant dense<0.000000e+00> : vector<16x64xf32>
    %22 = tpu.matmul %20, %21, %cst_13 {dimension_numbers = #tpu.dot_dimension_numbers<[1], [0], [0], [1], [0, 0, 1, 1], [], []>} : vector<16x32xf32>, vector<32x64xf32>, vector<16x64xf32> -> vector<16x64xf32>
    %c0_14 = arith.constant 0 : index
    %c0_15 = arith.constant 0 : index
    %23 = vector.load %arg7[%c0_14, %c0_15] : memref<1x64xf32, #tpu.memory_space<vmem>>, vector<1x64xf32>
    %24 = vector.broadcast %23 : vector<1x64xf32> to vector<16x64xf32>
    %25 = arith.addf %22, %24 : vector<16x64xf32>
    %26 = vector.extract_strided_slice %25 {offsets = [0, 0], sizes = [16, 32], strides = [1, 1]} : vector<16x64xf32> to vector<16x32xf32>
    %27 = arith.negf %26 : vector<16x32xf32>
    %28 = math.exp %27 : vector<16x32xf32>
    %cst_16 = arith.constant 1.000000e+00 : f32
    %29 = vector.broadcast %cst_16 : f32 to vector<16x32xf32>
    %30 = arith.addf %29, %28 : vector<16x32xf32>
    %31 = arith.divf %29, %30 : vector<16x32xf32>
    %32 = vector.extract_strided_slice %25 {offsets = [0, 32], sizes = [16, 32], strides = [1, 1]} : vector<16x64xf32> to vector<16x32xf32>
    %cst_17 = arith.constant 0.000000e+00 : f32
    %33 = vector.broadcast %cst_17 : f32 to vector<16x32xf32>
    %34 = arith.maximumf %32, %33 : vector<16x32xf32>
    %35 = arith.mulf %31, %34 : vector<16x32xf32>
    %cst_18 = arith.constant 1.000000e+00 : f32
    %36 = vector.broadcast %cst_18 : f32 to vector<16x32xf32>
    %37 = arith.subf %36, %31 : vector<16x32xf32>
    %38 = arith.mulf %37, %20 : vector<16x32xf32>
    %39 = arith.addf %35, %38 : vector<16x32xf32>
    %c0_19 = arith.constant 0 : index
    %c0_20 = arith.constant 0 : index
    %40 = vector.load %arg8[%c0_19, %c0_20] : memref<32x64xf32, #tpu.memory_space<vmem>>, vector<32x64xf32>
    %cst_21 = arith.constant dense<0.000000e+00> : vector<16x64xf32>
    %41 = tpu.matmul %39, %40, %cst_21 {dimension_numbers = #tpu.dot_dimension_numbers<[1], [0], [0], [1], [0, 0, 1, 1], [], []>} : vector<16x32xf32>, vector<32x64xf32>, vector<16x64xf32> -> vector<16x64xf32>
    %c0_22 = arith.constant 0 : index
    %c0_23 = arith.constant 0 : index
    %42 = vector.load %arg9[%c0_22, %c0_23] : memref<1x64xf32, #tpu.memory_space<vmem>>, vector<1x64xf32>
    %43 = vector.broadcast %42 : vector<1x64xf32> to vector<16x64xf32>
    %44 = arith.addf %41, %43 : vector<16x64xf32>
    %45 = vector.extract_strided_slice %44 {offsets = [0, 0], sizes = [16, 32], strides = [1, 1]} : vector<16x64xf32> to vector<16x32xf32>
    %46 = arith.negf %45 : vector<16x32xf32>
    %47 = math.exp %46 : vector<16x32xf32>
    %cst_24 = arith.constant 1.000000e+00 : f32
    %48 = vector.broadcast %cst_24 : f32 to vector<16x32xf32>
    %49 = arith.addf %48, %47 : vector<16x32xf32>
    %50 = arith.divf %48, %49 : vector<16x32xf32>
    %51 = vector.extract_strided_slice %44 {offsets = [0, 32], sizes = [16, 32], strides = [1, 1]} : vector<16x64xf32> to vector<16x32xf32>
    %cst_25 = arith.constant 0.000000e+00 : f32
    %52 = vector.broadcast %cst_25 : f32 to vector<16x32xf32>
    %53 = arith.maximumf %51, %52 : vector<16x32xf32>
    %54 = arith.mulf %50, %53 : vector<16x32xf32>
    %cst_26 = arith.constant 1.000000e+00 : f32
    %55 = vector.broadcast %cst_26 : f32 to vector<16x32xf32>
    %56 = arith.subf %55, %50 : vector<16x32xf32>
    %57 = arith.mulf %56, %39 : vector<16x32xf32>
    %58 = arith.addf %54, %57 : vector<16x32xf32>
    %c0_27 = arith.constant 0 : index
    %c0_28 = arith.constant 0 : index
    %59 = vector.load %arg10[%c0_27, %c0_28] : memref<16x32xf32, #tpu.memory_space<vmem>>, vector<16x32xf32>
    tpu.vector_store %arg10[%c0_27, %c0_28], %58 {strides = array<i32>} : memref<16x32xf32, #tpu.memory_space<vmem>>, vector<16x32xf32>,
    return
  }
  func.func @transform_0(%arg0: i32) -> (i32, i32) {
    %c0_i32 = arith.constant 0 : i32
    %c0_i32_0 = arith.constant 0 : i32
    return %arg0, %c0_i32 : i32, i32
  }
  func.func @transform_1(%arg0: i32) -> (i32, i32) {
    %c0_i32 = arith.constant 0 : i32
    %c0_i32_0 = arith.constant 0 : i32
    return %arg0, %c0_i32 : i32, i32
  }
  func.func @transform_2(%arg0: i32) -> (i32, i32) {
    %c0_i32 = arith.constant 0 : i32
    %c0_i32_0 = arith.constant 0 : i32
    %c0_i32_1 = arith.constant 0 : i32
    return %c0_i32, %c0_i32_0 : i32, i32
  }
  func.func @transform_3(%arg0: i32) -> (i32, i32) {
    %c0_i32 = arith.constant 0 : i32
    %c0_i32_0 = arith.constant 0 : i32
    %c0_i32_1 = arith.constant 0 : i32
    return %c0_i32, %c0_i32_0 : i32, i32
  }
  func.func @transform_4(%arg0: i32) -> (i32, i32) {
    %c0_i32 = arith.constant 0 : i32
    %c0_i32_0 = arith.constant 0 : i32
    %c0_i32_1 = arith.constant 0 : i32
    return %c0_i32, %c0_i32_0 : i32, i32
  }
  func.func @transform_5(%arg0: i32) -> (i32, i32) {
    %c0_i32 = arith.constant 0 : i32
    %c0_i32_0 = arith.constant 0 : i32
    %c0_i32_1 = arith.constant 0 : i32
    return %c0_i32, %c0_i32_0 : i32, i32
  }
  func.func @transform_6(%arg0: i32) -> (i32, i32) {
    %c0_i32 = arith.constant 0 : i32
    %c0_i32_0 = arith.constant 0 : i32
    %c0_i32_1 = arith.constant 0 : i32
    return %c0_i32, %c0_i32_0 : i32, i32
  }
  func.func @transform_7(%arg0: i32) -> (i32, i32) {
    %c0_i32 = arith.constant 0 : i32
    %c0_i32_0 = arith.constant 0 : i32
    %c0_i32_1 = arith.constant 0 : i32
    return %c0_i32, %c0_i32_0 : i32, i32
  }
  func.func @transform_8(%arg0: i32) -> (i32, i32) {
    %c0_i32 = arith.constant 0 : i32
    %c0_i32_0 = arith.constant 0 : i32
    %c0_i32_1 = arith.constant 0 : i32
    return %c0_i32, %c0_i32_0 : i32, i32
  }
  func.func @transform_9(%arg0: i32) -> (i32, i32) {
    %c0_i32 = arith.constant 0 : i32
    %c0_i32_0 = arith.constant 0 : i32
    return %arg0, %c0_i32 : i32, i32
  }
}

</mosaic_0001>

<bundles_post_ra>
// kernel: tpu_custom_call.1
= control target key start
LH: loop header
LB: loop body
LE: loop exit
PB: predicated region body
PF: predicated region fallthrough
CT: control target
= control target key end

     0   :  { %14 = vsyncpa [#allocation3], 0  ;;  %s901_s0 = inlined_call_operand.vmem [shape: bf16[16,128], index: 0, kind: input, shape index: {}]   ;;  %s902_s1 = inlined_call_operand.vmem [shape: bf16[16,32], index: 1, kind: input, shape index: {}]   ;;  %s903_s2 = inlined_call_operand.hbm [shape: f32[128,128], index: 2, kind: input, shape index: {}]   ;;  %s904_s3 = inlined_call_operand.vmem [shape: f32[1,32], index: 3, kind: input, shape index: {}]   ;;  %s905_s4 = inlined_call_operand.vmem [shape: f32[64,32], index: 4, kind: input, shape index: {}]   ;;  %s906_s5 = inlined_call_operand.vmem [shape: f32[32,64], index: 5, kind: input, shape index: {}]   ;;  %s907_s6 = inlined_call_operand.vmem [shape: f32[1,64], index: 6, kind: input, shape index: {}]   ;;  %s908_s7 = inlined_call_operand.vmem [shape: f32[32,64], index: 7, kind: input, shape index: {}]   ;;  %s909_s8 = inlined_call_operand.vmem [shape: f32[1,64], index: 8, kind: input, shape index: {}]   ;;  %s910_s9 = inlined_call_operand.hbm [shape: f32[16,32], index: 9, kind: output, shape index: {}]  }
   0x1   :  { %15 = vsyncpa [#allocation4], 0  ;;  %s751_s30 = smov [#allocation2]  }
   0x2   :  { %s25_s10 = sshll.u32 %s751_s30, 4  ;;  %s26_s10 = int_to_ptr.vmem [resolvable:$true] %s25_s10 }
   0x3   :  { %s715_s11 = scalar_lea.vmem %s26_s10, 2048  ;;  %p720_p1 = scmp.lt.s32.totalorder %s26_s10, %s26_s10 }
   0x4   :  { %p716_p0 = scmp.ne.s32.totalorder %s26_s10, %s715_s11  ;;  %p721_p2 = scmp.lt.s32.totalorder %s715_s11, %s715_s11 }
   0x6   :  { %p722_p3 = por %p721_p2, %p720_p1 }
   0x8   :  { %p723_p4 = pnand %p722_p3, %p716_p0 }
   0xa   :  { %726 = shalt.err (!%p723_p4)
}
   0xb   :  { %s752_s12 = smov 128   ;;  %s753_s13 = smov 8  }
   0xc   :  { %31 = dma.hbm_to_vmem [thread:$0]  %s903_s2, 2048, %s26_s10, [#allocation3], %s752_s12, %s752_s12, %s753_s13  }
   0xd   :  { %747 = dma.done.wait [#allocation3], 2048  }
   0xe   :  { %748 = vsyncadd [#allocation3], 4294965248  ;;  %v66_v0 = vld [vmem:[#allocation2 + $0x78] sm:$0xff]  ;;  %v65_v1 = vld [vmem:[#allocation2 + $0x70] sm:$0xff]  ;;  %s755_s2 = smov 96   ;;  %s756_s26 = smov 32  }
   0xf   :  { %608 = vmatprep.subr.mxu0 %v66_v0  ;;  %v64_v2 = vld [vmem:[#allocation2 + $0x68] sm:$0xff]  ;;  %v63_v3 = vld [vmem:[#allocation2 + $0x60] sm:$0xff]  ;;  %v62_v5 = vld [vmem:[#allocation2 + $0x58] sm:$0xff]  ;;  %vm191_vm0 = vcmask 261120   ;;  %vm202_vm1 = vcmask 523264  }
  0x10   :  { %609 = vmatpush3.msra.mxu0 %v66_v0  ;;  %v561_v4 = vld [vmem:[%s901_s0] sm:$0xff]   ;;  %v61_v7 = vld [vmem:[#allocation2 + $0x50] sm:$0xff]  ;;  %v60_v8 = vld [vmem:[#allocation2 + $0x48] sm:$0xff]  ;;  %s754_s0 = smov 64  }
  0x11   :  { %610 = vmatprep.subr.mxu0 %v65_v1  ;;  %v562_v6 = vunpack.c.l.bf16 %v561_v4  ;;  %v59_v9 = vld [vmem:[#allocation2 + $0x40] sm:$0xff]  ;;  %v58_v10 = vld [vmem:[#allocation2 + $0x38] sm:$0xff]  ;;  %v57_v11 = vld [vmem:[#allocation2 + $0x30] sm:$0xff]  ;;  %v563_v18 = vunpack.c.h.bf16 %v561_v4 }
  0x12   :  { %611 = vmatpush3.msra.mxu0 %v65_v1  ;;  %v56_v12 = vld [vmem:[#allocation2 + $0x28] sm:$0xff]  ;;  %v55_v13 = vld [vmem:[#allocation2 + $0x20] sm:$0xff]  ;;  %v54_v14 = vld [vmem:[#allocation2 + $0x18] sm:$0xff] }
  0x13   :  { %612 = vmatprep.subr.mxu0 %v64_v2  ;;  %640 = vmatprep.mubr.f32.mxu0 %v562_v6  ;;  %v53_v15 = vld [vmem:[#allocation2 + $0x10] sm:$0xff]  ;;  %v52_v16 = vld [vmem:[#allocation2 + $0x8] sm:$0xff]  ;;  %v51_v17 = vld [vmem:[#allocation2] sm:$0xff] }
  0x14   :  { %613 = vmatpush3.msra.mxu0 %v64_v2  ;;  %v201_v20 = vld [vmem:[%s905_s4 + $0x38] sm:$0xff]  ;;  %v200_v21 = vld [vmem:[%s905_s4 + $0x30] sm:$0xff]  ;;  %v199_v23 = vld [vmem:[%s905_s4 + $0x28] sm:$0xff] }
  0x15   :  { %614 = vmatprep.subr.mxu0 %v63_v3  ;;  %643 = vmatprep.subr.mxu1 %v201_v20  ;;  %v198_v24 = vld [vmem:[%s905_s4 + $0x20] sm:$0xff]  ;;  %v197_v25 = vld [vmem:[%s905_s4 + $0x18] sm:$0xff]  ;;  %v196_v26 = vld [vmem:[%s905_s4 + $0x10] sm:$0xff] }
  0x16   :  { %615 = vmatpush3.msra.mxu0 %v63_v3  ;;  %644 = vmatpush3.msra.mxu1 %v201_v20  ;;  %v195_v27 = vld [vmem:[%s905_s4 + $0x8] sm:$0xff]  ;;  %v194_v30 = vld [vmem:[%s905_s4] sm:$0xff]  ;;  %v287_v34 = vld [vmem:[%s906_s5 + $0x18] sm:$0xff] }
  0x17   :  { %616 = vmatprep.subr.mxu0 %v62_v5  ;;  %645 = vmatprep.subr.mxu1 %v200_v21  ;;  %v547_v38 = vld [vmem:[%s904_s3] ss:$0 sm:$0xff]  ;;  %v286_v54 = vld [vmem:[%s906_s5 + $0x10] sm:$0xff]  ;;  %v285_v55 = vld [vmem:[%s906_s5 + $0x8] sm:$0xff] }
  0x18   :  { %617 = vmatpush3.msra.mxu0 %v62_v5  ;;  %646 = vmatpush3.msra.mxu1 %v200_v21  ;;  %v565_v47 = vld [vmem:[%s902_s1] sm:$0xff]   ;;  %v409_v59 = vld [vmem:[%s908_s7 + $0x18] sm:$0xff]  ;;  %v408_v60 = vld [vmem:[%s908_s7 + $0x10] sm:$0xff] }
  0x19   :  { %618 = vmatprep.subr.mxu0 %v61_v7  ;;  %647 = vmatprep.subr.mxu1 %v199_v23  ;;  %v567_v48 = vunpack.c.h.bf16 %v565_v47  ;;  %v566_v49 = vunpack.c.l.bf16 %v565_v47  ;;  %v284_v56 = vld [vmem:[%s906_s5] sm:$0xff]  ;;  %v407_v61 = vld [vmem:[%s908_s7 + $0x8] sm:$0xff] }
  0x1a   :  { %619 = vmatpush3.msra.mxu0 %v61_v7  ;;  %648 = vmatpush3.msra.mxu1 %v199_v23  ;;  %v406_v62 = vld [vmem:[%s908_s7] sm:$0xff] }
  0x1b   :  { %620 = vmatprep.subr.mxu0 %v60_v8  ;;  %649 = vmatprep.subr.mxu1 %v198_v24  ;;  %v550_v63 = vld [vmem:[%s907_s6] ss:$0 sm:$0xff] }
  0x1c   :  { %621 = vmatpush3.msra.mxu0 %v60_v8  ;;  %650 = vmatpush3.msra.mxu1 %v198_v24  ;;  %v555_v24 = vld [vmem:[%s909_s8] ss:$0 sm:$0xff]  ;;  %s757_s8 = smov [#allocation5]  }
  0x1d   :  { %622 = vmatprep.subr.mxu0 %v59_v9  ;;  %651 = vmatprep.subr.mxu1 %v197_v25 }
  0x1e   :  { %623 = vmatpush3.msra.mxu0 %v59_v9  ;;  %652 = vmatpush3.msra.mxu1 %v197_v25 }
  0x1f   :  { %624 = vmatprep.subr.mxu0 %v58_v10  ;;  %653 = vmatprep.subr.mxu1 %v196_v26 }
  0x20   :  { %625 = vmatpush3.msra.mxu0 %v58_v10  ;;  %654 = vmatpush3.msra.mxu1 %v196_v26 }
  0x21   :  { %626 = vmatprep.subr.mxu0 %v57_v11  ;;  %655 = vmatprep.subr.mxu1 %v195_v27 }
  0x22   :  { %627 = vmatpush3.msra.mxu0 %v57_v11  ;;  %656 = vmatpush3.msra.mxu1 %v195_v27 }
  0x23   :  { %628 = vmatprep.subr.mxu0 %v56_v12  ;;  %657 = vmatprep.subr.mxu1 %v194_v30 }
  0x24   :  { %629 = vmatpush3.msra.mxu0 %v56_v12  ;;  %658 = vmatpush3.msra.mxu1 %v194_v30 }
  0x25   :  { %630 = vmatprep.subr.mxu0 %v55_v13  ;;  %662 = vmatprep.subr.mxu1 %v287_v34 }
  0x26   :  { %631 = vmatpush3.msra.mxu0 %v55_v13 }
  0x27   :  { %632 = vmatprep.subr.mxu0 %v54_v14 }
  0x28   :  { %633 = vmatpush3.msra.mxu0 %v54_v14 }
  0x29   :  { %634 = vmatprep.subr.mxu0 %v53_v15 }
  0x2a   :  { %635 = vmatpush3.msra.mxu0 %v53_v15 }
  0x2b   :  { %636 = vmatprep.subr.mxu0 %v52_v16 }
  0x2c   :  { %637 = vmatpush3.msra.mxu0 %v52_v16 }
  0x2d   :  { %638 = vmatprep.subr.mxu0 %v51_v17 }
  0x2e   :  { %639 = vmatpush3.msra.mxu0 %v51_v17 }
  0x2f   :  { %641 = vmatmul.mubr.f32.vlgmr.msra.gmra.mxu0 %v563_v18 }
  0xef   :  { %v642_v19 = vpop.f32.mrf.mxu0 }
  0xf0   :  { %154 = vrot.lane.b32.xlu1 %v642_v19, %s754_s0  ;;  %146 = vrot.lane.b32.xlu0 %v642_v19, %s755_s2 }
  0xf1   :  { %v133_v22 = vpop.f32.mrf.mxu0 }
  0xf4   :  { %152 = vrot.lane.b32.xlu1 %v133_v22, %s754_s0  ;;  %144 = vrot.lane.b32.xlu0 %v133_v22, %s755_s2 }
  0xf8   :  { %162 = vrot.lane.b32.xlu1 %v642_v19, %s756_s26  ;;  %160 = vrot.lane.b32.xlu0 %v133_v22, %s756_s26 }
 0x162   :  { %v155_v28 = vpop.permute.xlu1 %154  ;;  %v147_v29 = vpop.permute.xlu0 %146 }
 0x163   :  { %v151_v31 = vmax.f32 %v642_v19, %v147_v29 }
 0x165   :  { %v159_v36 = vmax.f32 %v151_v31, %v155_v28 }
 0x166   :  { %v153_v32 = vpop.permute.xlu1 %152  ;;  %v145_v33 = vpop.permute.xlu0 %144 }
 0x167   :  { %v150_v35 = vmax.f32 %v133_v22, %v145_v33 }
 0x169   :  { %v158_v37 = vmax.f32 %v150_v35, %v153_v32 }
 0x16a   :  { %v163_v39 = vpop.permute.xlu1 %162  ;;  %v161_v40 = vpop.permute.xlu0 %160 }
 0x16b   :  { %v167_v41 = vmax.f32 %v159_v36, %v163_v39  ;;  %v166_v42 = vmax.f32 %v158_v37, %v161_v40 }
 0x16d   :  { %v176_v43 = vadd.f32 %v547_v38, %v167_v41  ;;  %v175_v44 = vadd.f32 %v547_v38, %v166_v42 }
 0x16f   :  { %v178_v45 = vmax.f32 %v176_v43, 0.0  ;;  %v177_v46 = vmax.f32 %v175_v44, 0.0 }
 0x171   :  { %187 = vrot.lane.b32.xlu1 %v178_v45, %s756_s26  ;;  %185 = vrot.lane.b32.xlu0 %v177_v46, %s756_s26 }
 0x1e3   :  { %v188_v50 = vpop.permute.xlu1 %187  ;;  %v186_v51 = vpop.permute.xlu0 %185 }
 0x1e4   :  { %v193_v52 = vsel %vm191_vm0, %v567_v48, %v188_v50  ;;  %v192_v53 = vsel %vm191_vm0, %v566_v49, %v186_v51 }
 0x1e5   :  { %659 = vmatprep.mubr.msk.f32.mxu1 %vm202_vm1, %v192_v53 }
 0x1e6   :  { %660 = vmatmul.mubr.msk.f32.vlgmr.msra.gmra.mxu1 %vm202_vm1, %v193_v52 }
 0x1e7   :  { %663 = vmatpush3.msra.mxu1 %v287_v34 }
 0x1e8   :  { %664 = vmatprep.subr.mxu1 %v286_v54 }
 0x1e9   :  { %665 = vmatpush3.msra.mxu1 %v286_v54 }
 0x1ea   :  { %666 = vmatprep.subr.mxu1 %v285_v55 }
 0x1eb   :  { %667 = vmatpush3.msra.mxu1 %v285_v55 }
 0x1ec   :  { %668 = vmatprep.subr.mxu1 %v284_v56 }
 0x1ed   :  { %669 = vmatpush3.msra.mxu1 %v284_v56 }
 0x1ee   :  { %673 = vmatprep.subr.mxu1 %v409_v59 }
 0x2a6   :  { %v661_v57 = vpop.f32.mrf.mxu1 }
 0x2a8   :  { %v275_v58 = vpop.f32.mrf.mxu1 }
 0x2a9   :  { %670 = vmatprep.mubr.msk.f32.mxu1 %vm191_vm0, %v275_v58 }
 0x2aa   :  { %671 = vmatmul.mubr.msk.f32.vlgmr.msra.gmra.mxu1 %vm191_vm0, %v661_v57 }
 0x2ab   :  { %674 = vmatpush3.msra.mxu1 %v409_v59 }
 0x2ac   :  { %675 = vmatprep.subr.mxu1 %v408_v60 }
 0x2ad   :  { %676 = vmatpush3.msra.mxu1 %v408_v60 }
 0x2ae   :  { %677 = vmatprep.subr.mxu1 %v407_v61 }
 0x2af   :  { %678 = vmatpush3.msra.mxu1 %v407_v61 }
 0x2b0   :  { %679 = vmatprep.subr.mxu1 %v406_v62 }
 0x2b1   :  { %680 = vmatpush3.msra.mxu1 %v406_v62 }
 0x36a   :  { %v672_v0 = vpop.f32.mrf.mxu1 }
 0x36b   :  { %v373_v1 = vadd.f32 %v672_v0, %v550_v63 }
 0x36c   :  { %v367_v2 = vpop.f32.mrf.mxu1 }
 0x36d   :  { %v389_v3 = vmax.f32 %v373_v1, 0.0  ;;  %v368_v4 = vadd.f32 %v550_v63, %v367_v2  ;;  %v554_v7 = vmul.f32 -1.442695, %v373_v1 }
 0x36f   :  { %v388_v5 = vmax.f32 %v368_v4, 0.0  ;;  %394 = vrot.lane.b32.xlu1 %v389_v3, %s755_s2  ;;  %v553_v6 = vmul.f32 -1.442695, %v368_v4 }
 0x371   :  { %392 = vrot.lane.b32.xlu0 %v388_v5, %s755_s2  ;;  %691 = vpow2.f32 %v553_v6 }
 0x372   :  { %693 = vpow2.f32 %v554_v7 }
 0x37e   :  { %v692_v8 = vpop.eup %691 }
 0x37f   :  { %v694_v9 = vpop.eup %693  ;;  %v382_v10 = vadd.f32 1.0, %v692_v8 }
 0x380   :  { %v383_v11 = vadd.f32 1.0, %v694_v9 }
 0x381   :  { %695 = vrcp.f32 %v382_v10 }
 0x382   :  { %697 = vrcp.f32 %v383_v11 }
 0x38e   :  { %v696_v12 = vpop.eup %695 }
 0x38f   :  { %v698_v13 = vpop.eup %697  ;;  %v400_v14 = vsub.f32 1.0, %v696_v12 }
 0x390   :  { %v401_v16 = vsub.f32 1.0, %v698_v13 }
 0x391   :  { %v402_v20 = vmul.f32 %v400_v14, %v275_v58 }
 0x392   :  { %v403_v21 = vmul.f32 %v661_v57, %v401_v16 }
 0x3e1   :  { %v395_v15 = vpop.permute.xlu1 %394 }
 0x3e2   :  { %v399_v17 = vmul.f32 %v698_v13, %v395_v15 }
 0x3e3   :  { %v393_v18 = vpop.permute.xlu0 %392 }
 0x3e4   :  { %v398_v19 = vmul.f32 %v696_v12, %v393_v18  ;;  %v405_v23 = vadd.f32 %v403_v21, %v399_v17 }
 0x3e6   :  { %v404_v22 = vadd.f32 %v402_v20, %v398_v19 }
 0x3e8   :  { %681 = vmatprep.mubr.msk.f32.mxu1 %vm191_vm0, %v404_v22 }
 0x3e9   :  { %682 = vmatmul.mubr.msk.f32.vlgmr.msra.gmra.mxu1 %vm191_vm0, %v405_v23 }
 0x4a9   :  { %v683_v25 = vpop.f32.mrf.mxu1 }
 0x4aa   :  { %v495_v26 = vadd.f32 %v683_v25, %v555_v24 }
 0x4ab   :  { %v489_v27 = vpop.f32.mrf.mxu1 }
 0x4ac   :  { %v511_v28 = vmax.f32 %v495_v26, 0.0  ;;  %v490_v29 = vadd.f32 %v555_v24, %v489_v27  ;;  %v559_v31 = vmul.f32 -1.442695, %v495_v26 }
 0x4ae   :  { %v510_v30 = vmax.f32 %v490_v29, 0.0  ;;  %516 = vrot.lane.b32.xlu1 %v511_v28, %s755_s2  ;;  %v558_v32 = vmul.f32 -1.442695, %v490_v29  ;;  %699 = vpow2.f32 %v559_v31 }
 0x4b0   :  { %514 = vrot.lane.b32.xlu0 %v510_v30, %s755_s2  ;;  %701 = vpow2.f32 %v558_v32  ;;  %s535_s2 = sshll.u32 %s757_s8, 4  ;;  %s536_s2 = int_to_ptr.vmem [resolvable:$true] %s535_s2 }
 0x4b1   :  { %s727_s14 = scalar_lea.vmem %s536_s2, 256  ;;  %p732_p6 = scmp.lt.s32.totalorder %s536_s2, %s536_s2 }
 0x4b2   :  { %p728_p5 = scmp.ne.s32.totalorder %s536_s2, %s727_s14  ;;  %p733_p7 = scmp.lt.s32.totalorder %s727_s14, %s727_s14 }
 0x4b4   :  { %p734_p8 = por %p733_p7, %p732_p6 }
 0x4b6   :  { %p735_p9 = pnand %p734_p8, %p728_p5 }
 0x4bb   :  { %v700_v33 = vpop.eup %699 }
 0x4bc   :  { %v505_v35 = vadd.f32 1.0, %v700_v33 }
 0x4bd   :  { %v702_v34 = vpop.eup %701 }
 0x4be   :  { %v504_v36 = vadd.f32 1.0, %v702_v34  ;;  %703 = vrcp.f32 %v505_v35 }
 0x4c0   :  { %705 = vrcp.f32 %v504_v36 }
 0x4cb   :  { %v704_v37 = vpop.eup %703 }
 0x4cc   :  { %v523_v39 = vsub.f32 1.0, %v704_v37 }
 0x4cd   :  { %v706_v38 = vpop.eup %705 }
 0x4ce   :  { %v522_v40 = vsub.f32 1.0, %v706_v38  ;;  %v525_v43 = vmul.f32 %v523_v39, %v405_v23 }
 0x4d0   :  { %v524_v47 = vmul.f32 %v522_v40, %v404_v22 }
 0x520   :  { %v517_v41 = vpop.permute.xlu1 %516 }
 0x521   :  { %v521_v42 = vmul.f32 %v704_v37, %v517_v41 }
 0x522   :  { %v515_v44 = vpop.permute.xlu0 %514 }
 0x523   :  { %v527_v45 = vadd.f32 %v525_v43, %v521_v42  ;;  %v520_v46 = vmul.f32 %v706_v38, %v515_v44 }
 0x525   :  { %529 = vst.msk [vmem:[#allocation5 + $0x8] sm:$0xff] %vm191_vm0, %v527_v45  ;;  %v526_v48 = vadd.f32 %v524_v47, %v520_v46 }
 0x527   :  { %528 = vst.msk [vmem:[#allocation5] sm:$0xff] %vm191_vm0, %v526_v48 }
 0x528   :  { %738 = shalt.err (!%p735_p9)
}
 0x529   :  { %541 = dma.vmem_to_hbm [thread:$0]  %s536_s2, 256, %s910_s9, [#allocation4], %s752_s12, %s752_s12, %s753_s13  }
 0x52a   :  { %749 = dma.done.wait [#allocation4], 256  }
 0x52b   :  { %750 = vsyncadd [#allocation4], 4294967040 }
 0x52c   :  { %545 = vsyncpa [#allocation3], 1 }
 0x52d   :  { %546 = vsyncpa [#allocation4], 1 }

</bundles_post_ra>
